<compile_context>
chip_gen: v6e
topology: v6e:2x2x1
jax: 0.10.0
libtpu: 0.0.40
codegen_flags: <defaults>
</compile_context>

<pallas_src>
import functools

import jax
import jax.numpy as jnp
from jax import lax
from jax.experimental import pallas as pl
from jax.experimental.pallas import tpu as pltpu

LAMBDA_WEIGHT = 0.5   # HybridLoss.__init__ default
HUBER_DELTA = 1.0     # torch.nn.HuberLoss default delta
COS_EPS = 1e-8        # torch.nn.CosineSimilarity default eps


def _hybrid_loss_kernel(s_ref, t_ref, m_ref, out_ref, *, lambda_weight):
    s = s_ref[...].astype(jnp.float32)          # (TR, D)
    t = t_ref[...].astype(jnp.float32)          # (TR, D)
    m = m_ref[...]                              # (TR, 1) f32

    # Huber loss (reduction='none', delta=1.0), mean over hidden dim.
    d = s - t
    ad = jnp.abs(d)
    huber = jnp.where(ad <= HUBER_DELTA,
                      0.5 * d * d,
                      HUBER_DELTA * (ad - 0.5 * HUBER_DELTA))
    huber_per_token = jnp.mean(huber, axis=-1, keepdims=True)           # (TR, 1)

    # Cosine similarity along last dim (PyTorch eps-clamp semantics).
    dot = jnp.sum(s * t, axis=-1, keepdims=True)                        # (TR, 1)
    ss = jnp.sum(s * s, axis=-1, keepdims=True)
    tt = jnp.sum(t * t, axis=-1, keepdims=True)
    # max(sqrt(x), eps) == sqrt(max(x, eps^2)) for eps > 0 -> rsqrt on the EUP.
    inv_ns = lax.rsqrt(jnp.maximum(ss, COS_EPS * COS_EPS))
    inv_nt = lax.rsqrt(jnp.maximum(tt, COS_EPS * COS_EPS))
    cos_sim = dot * inv_ns * inv_nt
    cos_loss = (1.0 - cos_sim) * 0.5                                    # (TR, 1)

    combined = (1.0 - lambda_weight) * huber_per_token + lambda_weight * cos_loss
    out_ref[...] = combined * m                                         # (TR, 1)


def _vmem_capacity_bytes():
    try:
        return int(pltpu.get_tpu_info().vmem_capacity_bytes)
    except Exception:
        return 64 * 1024 * 1024  # conservative (v7x per-TC VMEM)


def _pick_tile_rows(n_rows, d, in_itemsize, vmem_bytes):
    # Per-row pipelined bytes: 2 big inputs x 2 pipeline buffers, plus mask and
    # per-row output (f32, 2 buffers each).
    per_row = 4 * d * in_itemsize + 4 * 4
    block_budget = vmem_bytes // 2
    tile = block_budget // max(per_row, 1)
    tile = min(tile, 2048)                         # gains saturate beyond ~1-2k rows
    tile = min(tile, ((n_rows + 7) // 8) * 8)      # never bigger than the problem
    tile = max(8, (tile // 8) * 8)                 # multiple of 8 sublanes
    return int(tile)


def hybrid_loss(student_output, teacher_output, mask, *,
                lambda_weight=LAMBDA_WEIGHT, tile_rows=None):
    B, S, D = student_output.shape
    N = B * S

    # Keep native dtype (e.g. bf16) — do NOT upcast before the kernel.
    s2 = student_output.reshape(N, D)
    t2 = teacher_output.reshape(N, D)
    m2 = mask.reshape(N, 1).astype(jnp.float32)

    itemsize = max(jnp.dtype(s2.dtype).itemsize, jnp.dtype(t2.dtype).itemsize)
    vmem_bytes = _vmem_capacity_bytes()
    if tile_rows is None:
        tile_rows = _pick_tile_rows(N, D, itemsize, vmem_bytes)

    # Pad rows to a multiple of tile_rows; padded rows are zero with mask=0, so
    # they contribute exactly 0 to both numerator and denominator.
    n_tiles = pl.cdiv(N, tile_rows)
    N_pad = n_tiles * tile_rows
    if N_pad != N:
        pad = N_pad - N
        s2 = jnp.pad(s2, ((0, pad), (0, 0)))
        t2 = jnp.pad(t2, ((0, pad), (0, 0)))
        m2 = jnp.pad(m2, ((0, pad), (0, 0)))

    kernel = functools.partial(_hybrid_loss_kernel,
                               lambda_weight=float(lambda_weight))

    per_row = pl.pallas_call(
        kernel,
        out_shape=jax.ShapeDtypeStruct((N_pad, 1), jnp.float32),
        grid_spec=pltpu.PrefetchScalarGridSpec(
            num_scalar_prefetch=0,
            grid=(n_tiles,),
            in_specs=[
                pl.BlockSpec((tile_rows, D), lambda i: (i, 0)),
                pl.BlockSpec((tile_rows, D), lambda i: (i, 0)),
                pl.BlockSpec((tile_rows, 1), lambda i: (i, 0)),
            ],
            out_specs=pl.BlockSpec((tile_rows, 1), lambda i: (i, 0)),
        ),
        compiler_params=pltpu.CompilerParams(
            # Each grid step writes its own output block -> safe to shard across
            # TensorCores (v7x megacore); no-op on single-TC v5e/v6e.
            dimension_semantics=("parallel",),
            vmem_limit_bytes=int(vmem_bytes * 0.75),
        ),
    )(s2, t2, m2)

    # Final masked mean: tiny (N,1) reduction + scalar divide, done by XLA.
    return per_row.sum() / m2.sum()


def _reference_loss(student, teacher, mask, lambda_weight=LAMBDA_WEIGHT):
    student = student.astype(jnp.float32)
    teacher = teacher.astype(jnp.float32)
    mask = mask.astype(jnp.float32)
    d = student - teacher
    ad = jnp.abs(d)
    huber = jnp.where(ad <= HUBER_DELTA, 0.5 * d * d,
                      HUBER_DELTA * (ad - 0.5 * HUBER_DELTA))
    huber_per_token = huber.mean(axis=-1)
    dot = jnp.sum(student * teacher, axis=-1)
    ns = jnp.sqrt(jnp.sum(student * student, axis=-1))
    nt = jnp.sqrt(jnp.sum(teacher * teacher, axis=-1))
    cos = dot / (jnp.maximum(ns, COS_EPS) * jnp.maximum(nt, COS_EPS))
    cos_loss = (1.0 - cos) / 2.0
    combined = (1.0 - lambda_weight) * huber_per_token + lambda_weight * cos_loss
    return (combined * mask).sum() / mask.sum()


if __name__ == "__main__":
    key = jax.random.PRNGKey(0)
    k1, k2, k3, k4, k5, k6 = jax.random.split(key, 6)

    # Test 1: f32, shapes from the module spec (batch=2, seq=8, hidden=32).
    B, S, D = 2, 8, 32
    student = jax.random.normal(k1, (B, S, D), dtype=jnp.float32)
    teacher = jax.random.normal(k2, (B, S, D), dtype=jnp.float32)
    mask = (jax.random.uniform(k3, (B, S)) > 0.3).astype(jnp.float32)

    loss = jax.block_until_ready(hybrid_loss(student, teacher, mask))
    ref = _reference_loss(student, teacher, mask)
    assert jnp.allclose(loss, ref, atol=1e-5, rtol=1e-5), (loss, ref)

    # Test 2: bf16 inputs + row count not divisible by the tile (exercises the
    # zero-padding path and the native-dtype fast path).
    B2, S2 = 3, 5
    student2 = jax.random.normal(k4, (B2, S2, D), dtype=jnp.bfloat16)
    teacher2 = jax.random.normal(k5, (B2, S2, D), dtype=jnp.bfloat16)
    mask2 = (jax.random.uniform(k6, (B2, S2)) > 0.3).astype(jnp.float32)

    loss2 = jax.block_until_ready(hybrid_loss(student2, teacher2, mask2))
    ref2 = _reference_loss(student2, teacher2, mask2)
    assert jnp.allclose(loss2, ref2, atol=1e-4, rtol=1e-4), (loss2, ref2)

    print("KERNEL_OK")
</pallas_src>

<mosaic_0001>
module attributes {stable_mosaic.version = 11 : i64} {
  func.func @_hybrid_loss_kernel(%arg0: i32, %arg1: memref<16x32xf32, #tpu.memory_space<vmem>>, %arg2: memref<16x32xf32, #tpu.memory_space<vmem>>, %arg3: memref<16x1xf32, #tpu.memory_space<vmem>>, %arg4: memref<16x1xf32, #tpu.memory_space<vmem>>) attributes {dimension_semantics = [#tpu.dimension_semantics<parallel>], iteration_bounds = array<i64: 1>, scalar_prefetch = 0 : i64, scratch_operands = 0 : i64, tpu.core_type = #tpu.core_type<tc>, window_params = [{transform_indices = @transform_0, window_bounds = array<i64: 16, 32>}, {transform_indices = @transform_1, window_bounds = array<i64: 16, 32>}, {transform_indices = @transform_2, window_bounds = array<i64: 16, 1>}, {transform_indices = @transform_3, window_bounds = array<i64: 16, 1>}]} {
    %c0 = arith.constant 0 : index
    %c0_0 = arith.constant 0 : index
    %0 = vector.load %arg1[%c0, %c0_0] : memref<16x32xf32, #tpu.memory_space<vmem>>, vector<16x32xf32>
    %c0_1 = arith.constant 0 : index
    %c0_2 = arith.constant 0 : index
    %1 = vector.load %arg2[%c0_1, %c0_2] : memref<16x32xf32, #tpu.memory_space<vmem>>, vector<16x32xf32>
    %c0_3 = arith.constant 0 : index
    %c0_4 = arith.constant 0 : index
    %2 = vector.load %arg3[%c0_3, %c0_4] : memref<16x1xf32, #tpu.memory_space<vmem>>, vector<16x1xf32>
    %3 = arith.subf %0, %1 : vector<16x32xf32>
    %4 = math.absf %3 : vector<16x32xf32>
    %cst = arith.constant 1.000000e+00 : f32
    %5 = vector.broadcast %cst : f32 to vector<16x32xf32>
    %6 = arith.cmpf ole, %4, %5 : vector<16x32xf32>
    %cst_5 = arith.constant 5.000000e-01 : f32
    %7 = vector.broadcast %cst_5 : f32 to vector<16x32xf32>
    %8 = arith.mulf %7, %3 : vector<16x32xf32>
    %9 = arith.mulf %8, %3 : vector<16x32xf32>
    %cst_6 = arith.constant 5.000000e-01 : f32
    %10 = vector.broadcast %cst_6 : f32 to vector<16x32xf32>
    %11 = arith.subf %4, %10 : vector<16x32xf32>
    %cst_7 = arith.constant 1.000000e+00 : f32
    %12 = vector.broadcast %cst_7 : f32 to vector<16x32xf32>
    %13 = arith.mulf %12, %11 : vector<16x32xf32>
    %14 = arith.select %6, %9, %13 : vector<16x32xi1>, vector<16x32xf32>
    %cst_8 = arith.constant dense<0.000000e+00> : vector<16xf32>
    %15 = vector.multi_reduction <add>, %14, %cst_8 [1] : vector<16x32xf32> to vector<16xf32>
    %16 = vector.shape_cast %15 : vector<16xf32> to vector<16x1xf32>
    %cst_9 = arith.constant 3.200000e+01 : f32
    %17 = vector.broadcast %cst_9 : f32 to vector<16x1xf32>
    %18 = arith.divf %16, %17 : vector<16x1xf32>
    %19 = arith.mulf %0, %1 : vector<16x32xf32>
    %cst_10 = arith.constant dense<0.000000e+00> : vector<16xf32>
    %20 = vector.multi_reduction <add>, %19, %cst_10 [1] : vector<16x32xf32> to vector<16xf32>
    %21 = vector.shape_cast %20 : vector<16xf32> to vector<16x1xf32>
    %22 = arith.mulf %0, %0 : vector<16x32xf32>
    %cst_11 = arith.constant dense<0.000000e+00> : vector<16xf32>
    %23 = vector.multi_reduction <add>, %22, %cst_11 [1] : vector<16x32xf32> to vector<16xf32>
    %24 = vector.shape_cast %23 : vector<16xf32> to vector<16x1xf32>
    %25 = arith.mulf %1, %1 : vector<16x32xf32>
    %cst_12 = arith.constant dense<0.000000e+00> : vector<16xf32>
    %26 = vector.multi_reduction <add>, %25, %cst_12 [1] : vector<16x32xf32> to vector<16xf32>
    %27 = vector.shape_cast %26 : vector<16xf32> to vector<16x1xf32>
    %cst_13 = arith.constant 1.000000e-16 : f32
    %28 = vector.broadcast %cst_13 : f32 to vector<16x1xf32>
    %29 = arith.maximumf %24, %28 : vector<16x1xf32>
    %30 = math.rsqrt %29 : vector<16x1xf32>
    %cst_14 = arith.constant 1.000000e-16 : f32
    %31 = vector.broadcast %cst_14 : f32 to vector<16x1xf32>
    %32 = arith.maximumf %27, %31 : vector<16x1xf32>
    %33 = math.rsqrt %32 : vector<16x1xf32>
    %34 = arith.mulf %21, %30 : vector<16x1xf32>
    %35 = arith.mulf %34, %33 : vector<16x1xf32>
    %cst_15 = arith.constant 1.000000e+00 : f32
    %36 = vector.broadcast %cst_15 : f32 to vector<16x1xf32>
    %37 = arith.subf %36, %35 : vector<16x1xf32>
    %cst_16 = arith.constant 5.000000e-01 : f32
    %38 = vector.broadcast %cst_16 : f32 to vector<16x1xf32>
    %39 = arith.mulf %37, %38 : vector<16x1xf32>
    %cst_17 = arith.constant 5.000000e-01 : f32
    %40 = vector.broadcast %cst_17 : f32 to vector<16x1xf32>
    %41 = arith.mulf %40, %18 : vector<16x1xf32>
    %cst_18 = arith.constant 5.000000e-01 : f32
    %42 = vector.broadcast %cst_18 : f32 to vector<16x1xf32>
    %43 = arith.mulf %42, %39 : vector<16x1xf32>
    %44 = arith.addf %41, %43 : vector<16x1xf32>
    %45 = arith.mulf %44, %2 : vector<16x1xf32>
    %c0_19 = arith.constant 0 : index
    %c0_20 = arith.constant 0 : index
    %46 = vector.load %arg4[%c0_19, %c0_20] : memref<16x1xf32, #tpu.memory_space<vmem>>, vector<16x1xf32>
    tpu.vector_store %arg4[%c0_19, %c0_20], %45 {strides = array<i32>} : memref<16x1xf32, #tpu.memory_space<vmem>>, vector<16x1xf32>,
    return
  }
  func.func @transform_0(%arg0: i32) -> (i32, i32) {
    %c0_i32 = arith.constant 0 : i32
    %c0_i32_0 = arith.constant 0 : i32
    return %arg0, %c0_i32 : i32, i32
  }
  func.func @transform_1(%arg0: i32) -> (i32, i32) {
    %c0_i32 = arith.constant 0 : i32
    %c0_i32_0 = arith.constant 0 : i32
    return %arg0, %c0_i32 : i32, i32
  }
  func.func @transform_2(%arg0: i32) -> (i32, i32) {
    %c0_i32 = arith.constant 0 : i32
    %c0_i32_0 = arith.constant 0 : i32
    return %arg0, %c0_i32 : i32, i32
  }
  func.func @transform_3(%arg0: i32) -> (i32, i32) {
    %c0_i32 = arith.constant 0 : i32
    %c0_i32_0 = arith.constant 0 : i32
    return %arg0, %c0_i32 : i32, i32
  }
}

</mosaic_0001>

<bundles_post_ra>
// kernel: tpu_custom_call.1
= control target key start
LH: loop header
LB: loop body
LE: loop exit
PB: predicated region body
PF: predicated region fallthrough
CT: control target
= control target key end

     0   :  { %8 = vsyncpa [#allocation3], 0  ;;  %s149_s12 = smov [#allocation2]   ;;  %s201_s0 = inlined_call_operand.vmem [shape: f32[16,32], index: 0, kind: input, shape index: {}]   ;;  %s202_s1 = inlined_call_operand.hbm [shape: f32[16,32], index: 1, kind: input, shape index: {}]   ;;  %s203_s2 = inlined_call_operand.vmem [shape: f32[16,1], index: 2, kind: input, shape index: {}]   ;;  %s204_s3 = inlined_call_operand.vmem [shape: f32[16,1], index: 3, kind: output, shape index: {}]  }
   0x1   :  { %s16_s13 = sshll.u32 %s149_s12, 4  ;;  %s17_s13 = int_to_ptr.vmem [resolvable:$true] %s16_s13 }
   0x2   :  { %s135_s14 = scalar_lea.vmem %s17_s13, 256  ;;  %p140_p1 = scmp.lt.s32.totalorder %s17_s13, %s17_s13 }
   0x3   :  { %p136_p0 = scmp.ne.s32.totalorder %s17_s13, %s135_s14  ;;  %p141_p2 = scmp.lt.s32.totalorder %s135_s14, %s135_s14 }
   0x5   :  { %p142_p3 = por %p141_p2, %p140_p1 }
   0x7   :  { %p143_p4 = pnand %p142_p3, %p136_p0 }
   0x9   :  { %146 = shalt.err (!%p143_p4)
}
   0xa   :  { %s150_s15 = smov 128   ;;  %s151_s16 = smov 8  }
   0xb   :  { %22 = dma.hbm_to_vmem [thread:$0]  %s202_s1, 256, %s17_s13, [#allocation3], %s150_s15, %s150_s15, %s151_s16  }
   0xc   :  { %147 = dma.done.wait [#allocation3], 256  }
   0xd   :  { %148 = vsyncadd [#allocation3], 4294967040  ;;  %v28_v0 = vld [vmem:[%s201_s0] sm:$0xff]  ;;  %vm48_vm0 = vcmask 261120   ;;  %v29_v2 = vld [vmem:[%s201_s0 + $0x8] sm:$0xff]  ;;  %vm106_vm3 = vcmask 7168  }
   0xe   :  { %v30_v1 = vld [vmem:[#allocation2] sm:$0xff]  ;;  %v66_v3 = vmul.f32 %v28_v0, %v28_v0  ;;  %v67_v6 = vmul.f32 %v29_v2, %v29_v2  ;;  %v31_v7 = vld [vmem:[#allocation2 + $0x8] sm:$0xff] }
   0xf   :  { %v74_v4 = vmul.f32 %v30_v1, %v30_v1  ;;  %v34_v5 = vsub.f32 %v28_v0, %v30_v1  ;;  %v75_v8 = vmul.f32 %v31_v7, %v31_v7  ;;  %v35_v9 = vsub.f32 %v29_v2, %v31_v7  ;;  %v32_v57 = vld [vmem:[%s203_s2] sm:$0xff]  ;;  %v33_v63 = vld [vmem:[%s203_s2 + $0x8] sm:$0xff] }
  0x10   :  { %v68_v10 = vsel %vm48_vm0, %v66_v3, 0.0  ;;  %v58_v13 = vmul.f32 %v30_v1, %v28_v0  ;;  %v59_v14 = vmul.f32 %v31_v7, %v29_v2  ;;  %v71_v16 = vsel %vm48_vm0, %v67_v6, 0.0 }
  0x11   :  { %v76_v11 = vsel %vm48_vm0, %v74_v4, 0.0  ;;  %v36_v12 = vand.u32 2147483647, %v34_v5  ;;  %69 = vadd.xlane.f32.xlu0 %v68_v10  ;;  %v40_v15 = vmul.f32 0.5, %v34_v5  ;;  %v79_v17 = vsel %vm48_vm0, %v75_v8, 0.0 }
  0x12   :  { %77 = vadd.xlane.f32.xlu1 %v76_v11  ;;  %v37_v18 = vand.u32 2147483647, %v35_v9  ;;  %v41_v19 = vmul.f32 0.5, %v35_v9  ;;  %v60_v24 = vsel %vm48_vm0, %v58_v13, 0.0  ;;  %v63_v25 = vsel %vm48_vm0, %v59_v14, 0.0 }
  0x13   :  { %v42_v20 = vmul.f32 %v40_v15, %v34_v5  ;;  %v114_v21 = vadd.f32 -0.5, %v36_v12  ;;  %vm38_vm1 = vcmp.le.f32.partialorder %v36_v12, 1.0 }
  0x14   :  { %vm39_vm2 = vcmp.le.f32.partialorder %v37_v18, 1.0  ;;  %v43_v22 = vmul.f32 %v41_v19, %v35_v9  ;;  %v115_v23 = vadd.f32 -0.5, %v37_v18 }
  0x15   :  { %72 = vadd.xlane.f32.xlu0 %v71_v16  ;;  %v46_v26 = vsel %vm38_vm1, %v42_v20, %v114_v21 }
  0x16   :  { %80 = vadd.xlane.f32.xlu1 %v79_v17  ;;  %v47_v27 = vsel %vm39_vm2, %v43_v22, %v115_v23  ;;  %v49_v28 = vsel %vm48_vm0, %v46_v26, 0.0 }
  0x17   :  { %v52_v29 = vsel %vm48_vm0, %v47_v27, 0.0 }
  0x19   :  { %61 = vadd.xlane.f32.xlu0 %v60_v24 }
  0x1a   :  { %64 = vadd.xlane.f32.xlu1 %v63_v25 }
  0x1d   :  { %50 = vadd.xlane.f32.xlu0 %v49_v28 }
  0x1e   :  { %53 = vadd.xlane.f32.xlu1 %v52_v29 }
  0x9a   :  { %v70_v30 = vpop.xlane.xlu0 %69 }
  0x9b   :  { %v78_v31 = vpop.xlane.xlu1 %77  ;;  %v82_v32 = vmax.f32 %v70_v30, 1e-16 }
  0x9c   :  { %v86_v33 = vmax.f32 %v78_v31, 1e-16 }
  0x9d   :  { %119 = vrsqrt.f32 %v82_v32 }
  0x9e   :  { %121 = vrsqrt.f32 %v86_v33  ;;  %v73_v34 = vpop.xlane.xlu0 %72 }
  0x9f   :  { %v81_v35 = vpop.xlane.xlu1 %80  ;;  %v83_v36 = vmax.f32 %v73_v34, 1e-16 }
  0xa0   :  { %v87_v37 = vmax.f32 %v81_v35, 1e-16 }
  0xa1   :  { %123 = vrsqrt.f32 %v83_v36 }
  0xa2   :  { %125 = vrsqrt.f32 %v87_v37  ;;  %v62_v38 = vpop.xlane.xlu0 %61 }
  0xa3   :  { %v65_v40 = vpop.xlane.xlu1 %64 }
  0xa6   :  { %v51_v41 = vpop.xlane.xlu0 %50 }
  0xa7   :  { %v56_v45 = vmul.f32 0.03125, %v51_v41  ;;  %v54_v47 = vpop.xlane.xlu1 %53 }
  0xa8   :  { %v57_v54 = vmul.f32 0.03125, %v54_v47 }
  0xa9   :  { %v98_v53 = vmul.f32 0.5, %v56_v45 }
  0xaa   :  { %v120_v39 = vpop.eup %119  ;;  %v99_v60 = vmul.f32 0.5, %v57_v54 }
  0xab   :  { %v122_v42 = vpop.eup %121  ;;  %v90_v43 = vmul.f32 %v120_v39, %v62_v38 }
  0xad   :  { %v92_v44 = vmul.f32 %v122_v42, %v90_v43 }
  0xae   :  { %v124_v46 = vpop.eup %123 }
  0xaf   :  { %v126_v48 = vpop.eup %125  ;;  %v94_v49 = vsub.f32 1.0, %v92_v44  ;;  %v91_v50 = vmul.f32 %v124_v46, %v65_v40 }
  0xb1   :  { %v96_v51 = vmul.f32 0.5, %v94_v49  ;;  %v93_v52 = vmul.f32 %v126_v48, %v91_v50 }
  0xb3   :  { %v100_v55 = vmul.f32 0.5, %v96_v51  ;;  %v95_v56 = vsub.f32 1.0, %v93_v52 }
  0xb5   :  { %v97_v58 = vmul.f32 0.5, %v95_v56  ;;  %v102_v59 = vadd.f32 %v100_v55, %v98_v53 }
  0xb7   :  { %v101_v61 = vmul.f32 0.5, %v97_v58  ;;  %v104_v62 = vmul.f32 %v102_v59, %v32_v57 }
  0xb9   :  { %107 = vst.msk [vmem:[%s204_s3] sm:$0xff] %vm106_vm3, %v104_v62  ;;  %v103_v0 = vadd.f32 %v101_v61, %v99_v60 }
  0xbb   :  { %v105_v1 = vmul.f32 %v103_v0, %v33_v63 }
  0xbd   :  { %108 = vst.msk [vmem:[%s204_s3 + $0x8] sm:$0xff] %vm106_vm3, %v105_v1 }
  0xbe   :  { %113 = vsyncpa [#allocation3], 1 }

</bundles_post_ra>
